<compile_context>
chip_gen: v7x
topology: tpu7x:2x2x1
jax: 0.10.0
libtpu: 0.0.40
codegen_flags: <defaults>
</compile_context>

<pallas_src>
import functools

import jax
import jax.numpy as jnp
from jax.experimental import pallas as pl
from jax.experimental.pallas import tpu as pltpu

HIDDEN = 32           # config.hidden_size (small synthetic value)
VOCAB = 768           # decoder output size (fixed by the module)
LN_EPS = 1e-12        # config.layer_norm_eps (BERT-style default)

_DEFAULT_BLOCK_M = 1024   # target rows per grid step (sweepable)


def _head_kernel(x_ref, w1_ref, b1_ref, g_ref, beta_ref, w2_ref, b2_ref, o_ref):
    # x_ref:    (TM, H)
    # w1_ref:   (H, H)    pre-transposed -> [in, out]
    # b1_ref:   (1, H)
    # g_ref:    (1, H)    LayerNorm weight
    # beta_ref: (1, H)    LayerNorm bias
    # w2_ref:   (H, V)    pre-transposed -> [in, out]
    # b2_ref:   (1, V)    decoder bias (zeros Parameter in the module)
    # o_ref:    (TM, V)
    x = x_ref[...]

    # dense: x @ W1 + b1
    h = jnp.dot(x, w1_ref[...], preferred_element_type=jnp.float32) + b1_ref[...]

    # exact GELU: 0.5 * x * (1 + erf(x / sqrt(2)))
    h = 0.5 * h * (1.0 + jax.lax.erf(h * (1.0 / jnp.sqrt(2.0).astype(jnp.float32))))

    # LayerNorm over last dim
    mean = jnp.mean(h, axis=-1, keepdims=True)
    centered = h - mean
    var = jnp.mean(centered * centered, axis=-1, keepdims=True)
    h = centered * jax.lax.rsqrt(var + LN_EPS) * g_ref[...] + beta_ref[...]

    # decoder: h @ W2 + bias
    o_ref[...] = (jnp.dot(h, w2_ref[...], preferred_element_type=jnp.float32)
                  + b2_ref[...])


def prepare_params(w1, b1, ln_w, ln_b, w2, b2):
    """One-time layout plumbing: transpose weights to [in, out], make biases 2-D.

    Call once at parameter-load time (not inside the per-step forward) so the
    transposes do not burn an extra HBM round trip on every invocation.
    """
    H = w1.shape[0]
    return (
        jnp.asarray(w1).T,                    # (H, H)
        jnp.asarray(b1).reshape(1, H),        # (1, H)
        jnp.asarray(ln_w).reshape(1, H),      # (1, H)
        jnp.asarray(ln_b).reshape(1, H),      # (1, H)
        jnp.asarray(w2).T,                    # (H, V)
        jnp.asarray(b2).reshape(1, VOCAB),    # (1, V)
    )


def _round_up(x, m):
    return ((x + m - 1) // m) * m


def _choose_block_m(n_rows, requested):
    """Pick the row tile: multiple of 8, <= requested target, and (when the
    problem allows) small enough to leave >= 2 grid steps so both v7x
    TensorCores get work."""
    if n_rows <= 8:
        return 8
    half = _round_up(-(-n_rows // 2), 8)      # ceil(n/2) rounded up to 8
    bm = min(requested, half)
    bm = max(8, (bm // 8) * 8)
    return bm


@functools.partial(jax.jit, static_argnames=("block_m",))
def _forward_2d(x2, w1_t, b1_2d, g_2d, beta_2d, w2_t, b2_2d, *, block_m):
    N, H = x2.shape
    grid = (pl.cdiv(N, block_m),)

    # VMEM budget: double-buffered x tile + double-buffered out tile + weights.
    # Raise the scoped limit only when the tile actually needs it (e.g. very
    # large block_m on v5e's 16 MiB default); stay well under v7x's 64 MiB
    # physical VMEM.
    est_bytes = 2 * (block_m * H * 4 + block_m * VOCAB * 4) \
        + 2 * (H * H * 4 + H * VOCAB * 4 + 4 * H * 4 + VOCAB * 4)
    vmem_limit = None
    if est_bytes > 14 * 1024 * 1024:
        vmem_limit = min(int(est_bytes * 1.25), 56 * 1024 * 1024)

    compiler_params = pltpu.CompilerParams(
        dimension_semantics=("parallel",),
        vmem_limit_bytes=vmem_limit,
    )

    return pl.pallas_call(
        _head_kernel,
        out_shape=jax.ShapeDtypeStruct((N, VOCAB), jnp.float32),
        grid_spec=pltpu.PrefetchScalarGridSpec(
            num_scalar_prefetch=0,
            grid=grid,
            in_specs=[
                pl.BlockSpec((block_m, H), lambda i: (i, 0)),     # x tile
                pl.BlockSpec((H, H), lambda i: (0, 0)),           # W1^T
                pl.BlockSpec((1, H), lambda i: (0, 0)),           # b1
                pl.BlockSpec((1, H), lambda i: (0, 0)),           # LN weight
                pl.BlockSpec((1, H), lambda i: (0, 0)),           # LN bias
                pl.BlockSpec((H, VOCAB), lambda i: (0, 0)),       # W2^T
                pl.BlockSpec((1, VOCAB), lambda i: (0, 0)),       # decoder bias
            ],
            out_specs=pl.BlockSpec((block_m, VOCAB), lambda i: (i, 0)),
        ),
        compiler_params=compiler_params,
    )(x2, w1_t, b1_2d, g_2d, beta_2d, w2_t, b2_2d)


def visual_lm_prediction_head(x, prepared_params, *, block_m=_DEFAULT_BLOCK_M):
    """x: [B, S, H] float32; prepared_params from prepare_params().
    Returns [B, S, 768] float32."""
    B, S, H = x.shape
    N = B * S
    bm = _choose_block_m(N, block_m)
    out = _forward_2d(x.reshape(N, H), *prepared_params, block_m=bm)
    return out.reshape(B, S, VOCAB)


def _reference(x, w1, b1, ln_w, ln_b, w2, b2):
    h = jnp.einsum("bsh,oh->bso", x, w1) + b1
    h = 0.5 * h * (1.0 + jax.lax.erf(h / jnp.sqrt(2.0)))
    mean = jnp.mean(h, axis=-1, keepdims=True)
    var = jnp.mean((h - mean) ** 2, axis=-1, keepdims=True)
    h = (h - mean) / jnp.sqrt(var + LN_EPS) * ln_w + ln_b
    return jnp.einsum("bsh,oh->bso", h, w2) + b2


if __name__ == "__main__":
    key = jax.random.PRNGKey(0)
    k_x, k_w1, k_b1, k_w2 = jax.random.split(key, 4)

    B, S, H = 2, 8, HIDDEN

    # deterministic synthetic parameters (shapes match the PyTorch module)
    x = jax.random.normal(k_x, (B, S, H), dtype=jnp.float32)
    w1 = jax.random.normal(k_w1, (H, H), dtype=jnp.float32) * 0.1      # dense.weight
    b1 = jax.random.normal(k_b1, (H,), dtype=jnp.float32) * 0.1        # dense.bias
    ln_w = jnp.ones((H,), dtype=jnp.float32)                           # LayerNorm.weight
    ln_b = jnp.zeros((H,), dtype=jnp.float32)                          # LayerNorm.bias
    w2 = jax.random.normal(k_w2, (VOCAB, H), dtype=jnp.float32) * 0.1  # decoder.weight
    b2 = jnp.zeros((VOCAB,), dtype=jnp.float32)                        # self.bias (zeros)

    # One-time parameter layout prep (hoisted out of the forward call).
    params = prepare_params(w1, b1, ln_w, ln_b, w2, b2)

    y = visual_lm_prediction_head(x, params)
    jax.block_until_ready(y)

    y_ref = _reference(x, w1, b1, ln_w, ln_b, w2, b2)
    assert y.shape == (B, S, VOCAB)
    assert jnp.allclose(y, y_ref, atol=1e-4, rtol=1e-4), (
        float(jnp.max(jnp.abs(y - y_ref))))

    print("KERNEL_OK")
</pallas_src>

<mosaic_0001>
module attributes {stable_mosaic.version = 11 : i64} {
  func.func @_head_kernel(%arg0: i32, %arg1: memref<8x32xf32, #tpu.memory_space<vmem>>, %arg2: memref<32x32xf32, #tpu.memory_space<vmem>>, %arg3: memref<1x32xf32, #tpu.memory_space<vmem>>, %arg4: memref<1x32xf32, #tpu.memory_space<vmem>>, %arg5: memref<1x32xf32, #tpu.memory_space<vmem>>, %arg6: memref<32x768xf32, #tpu.memory_space<vmem>>, %arg7: memref<1x768xf32, #tpu.memory_space<vmem>>, %arg8: memref<8x768xf32, #tpu.memory_space<vmem>>) attributes {dimension_semantics = [#tpu.dimension_semantics<parallel>], iteration_bounds = array<i64: 2>, scalar_prefetch = 0 : i64, scratch_operands = 0 : i64, tpu.core_type = #tpu.core_type<tc>, window_params = [{transform_indices = @transform_0, window_bounds = array<i64: 8, 32>}, {pipeline_mode = #tpu.pipeline_mode<synchronous>, transform_indices = @transform_1, window_bounds = array<i64: 32, 32>}, {pipeline_mode = #tpu.pipeline_mode<synchronous>, transform_indices = @transform_2, window_bounds = array<i64: 1, 32>}, {pipeline_mode = #tpu.pipeline_mode<synchronous>, transform_indices = @transform_3, window_bounds = array<i64: 1, 32>}, {pipeline_mode = #tpu.pipeline_mode<synchronous>, transform_indices = @transform_4, window_bounds = array<i64: 1, 32>}, {pipeline_mode = #tpu.pipeline_mode<synchronous>, transform_indices = @transform_5, window_bounds = array<i64: 32, 768>}, {pipeline_mode = #tpu.pipeline_mode<synchronous>, transform_indices = @transform_6, window_bounds = array<i64: 1, 768>}, {transform_indices = @transform_7, window_bounds = array<i64: 8, 768>}]} {
    %c0 = arith.constant 0 : index
    %c0_0 = arith.constant 0 : index
    %0 = vector.load %arg1[%c0, %c0_0] : memref<8x32xf32, #tpu.memory_space<vmem>>, vector<8x32xf32>
    %c0_1 = arith.constant 0 : index
    %c0_2 = arith.constant 0 : index
    %1 = vector.load %arg2[%c0_1, %c0_2] : memref<32x32xf32, #tpu.memory_space<vmem>>, vector<32x32xf32>
    %cst = arith.constant dense<0.000000e+00> : vector<8x32xf32>
    %2 = tpu.matmul %0, %1, %cst {dimension_numbers = #tpu.dot_dimension_numbers<[1], [0], [0], [1], [0, 0, 1, 1], [], []>} : vector<8x32xf32>, vector<32x32xf32>, vector<8x32xf32> -> vector<8x32xf32>
    %c0_3 = arith.constant 0 : index
    %c0_4 = arith.constant 0 : index
    %3 = vector.load %arg3[%c0_3, %c0_4] : memref<1x32xf32, #tpu.memory_space<vmem>>, vector<1x32xf32>
    %4 = vector.broadcast %3 : vector<1x32xf32> to vector<8x32xf32>
    %5 = arith.addf %2, %4 : vector<8x32xf32>
    %cst_5 = arith.constant 5.000000e-01 : f32
    %6 = vector.broadcast %cst_5 : f32 to vector<8x32xf32>
    %7 = arith.mulf %6, %5 : vector<8x32xf32>
    %cst_6 = arith.constant 2.000000e+00 : f32
    %8 = math.sqrt %cst_6 : f32
    %cst_7 = arith.constant 1.000000e+00 : f32
    %9 = arith.divf %cst_7, %8 : f32
    %10 = vector.broadcast %9 : f32 to vector<8x32xf32>
    %11 = arith.mulf %5, %10 : vector<8x32xf32>
    %12 = math.erf %11 : vector<8x32xf32>
    %cst_8 = arith.constant 1.000000e+00 : f32
    %13 = vector.broadcast %cst_8 : f32 to vector<8x32xf32>
    %14 = arith.addf %13, %12 : vector<8x32xf32>
    %15 = arith.mulf %7, %14 : vector<8x32xf32>
    %cst_9 = arith.constant dense<0.000000e+00> : vector<8xf32>
    %16 = vector.multi_reduction <add>, %15, %cst_9 [1] : vector<8x32xf32> to vector<8xf32>
    %17 = vector.shape_cast %16 : vector<8xf32> to vector<8x1xf32>
    %cst_10 = arith.constant 3.200000e+01 : f32
    %18 = vector.broadcast %cst_10 : f32 to vector<8x1xf32>
    %19 = arith.divf %17, %18 : vector<8x1xf32>
    %20 = vector.broadcast %19 : vector<8x1xf32> to vector<8x32xf32>
    %21 = arith.subf %15, %20 : vector<8x32xf32>
    %22 = arith.mulf %21, %21 : vector<8x32xf32>
    %cst_11 = arith.constant dense<0.000000e+00> : vector<8xf32>
    %23 = vector.multi_reduction <add>, %22, %cst_11 [1] : vector<8x32xf32> to vector<8xf32>
    %24 = vector.shape_cast %23 : vector<8xf32> to vector<8x1xf32>
    %cst_12 = arith.constant 3.200000e+01 : f32
    %25 = vector.broadcast %cst_12 : f32 to vector<8x1xf32>
    %26 = arith.divf %24, %25 : vector<8x1xf32>
    %cst_13 = arith.constant 9.99999996E-13 : f32
    %27 = vector.broadcast %cst_13 : f32 to vector<8x1xf32>
    %28 = arith.addf %26, %27 : vector<8x1xf32>
    %29 = math.rsqrt %28 : vector<8x1xf32>
    %30 = vector.broadcast %29 : vector<8x1xf32> to vector<8x32xf32>
    %31 = arith.mulf %21, %30 : vector<8x32xf32>
    %c0_14 = arith.constant 0 : index
    %c0_15 = arith.constant 0 : index
    %32 = vector.load %arg4[%c0_14, %c0_15] : memref<1x32xf32, #tpu.memory_space<vmem>>, vector<1x32xf32>
    %33 = vector.broadcast %32 : vector<1x32xf32> to vector<8x32xf32>
    %34 = arith.mulf %31, %33 : vector<8x32xf32>
    %c0_16 = arith.constant 0 : index
    %c0_17 = arith.constant 0 : index
    %35 = vector.load %arg5[%c0_16, %c0_17] : memref<1x32xf32, #tpu.memory_space<vmem>>, vector<1x32xf32>
    %36 = vector.broadcast %35 : vector<1x32xf32> to vector<8x32xf32>
    %37 = arith.addf %34, %36 : vector<8x32xf32>
    %c0_18 = arith.constant 0 : index
    %c0_19 = arith.constant 0 : index
    %38 = vector.load %arg6[%c0_18, %c0_19] : memref<32x768xf32, #tpu.memory_space<vmem>>, vector<32x768xf32>
    %cst_20 = arith.constant dense<0.000000e+00> : vector<8x768xf32>
    %39 = tpu.matmul %37, %38, %cst_20 {dimension_numbers = #tpu.dot_dimension_numbers<[1], [0], [0], [1], [0, 0, 1, 1], [], []>} : vector<8x32xf32>, vector<32x768xf32>, vector<8x768xf32> -> vector<8x768xf32>
    %c0_21 = arith.constant 0 : index
    %c0_22 = arith.constant 0 : index
    %40 = vector.load %arg7[%c0_21, %c0_22] : memref<1x768xf32, #tpu.memory_space<vmem>>, vector<1x768xf32>
    %41 = vector.broadcast %40 : vector<1x768xf32> to vector<8x768xf32>
    %42 = arith.addf %39, %41 : vector<8x768xf32>
    %c0_23 = arith.constant 0 : index
    %c0_24 = arith.constant 0 : index
    %43 = vector.load %arg8[%c0_23, %c0_24] : memref<8x768xf32, #tpu.memory_space<vmem>>, vector<8x768xf32>
    tpu.vector_store %arg8[%c0_23, %c0_24], %42 {strides = array<i32>} : memref<8x768xf32, #tpu.memory_space<vmem>>, vector<8x768xf32>,
    return
  }
  func.func @transform_0(%arg0: i32) -> (i32, i32) {
    %c0_i32 = arith.constant 0 : i32
    %c0_i32_0 = arith.constant 0 : i32
    return %arg0, %c0_i32 : i32, i32
  }
  func.func @transform_1(%arg0: i32) -> (i32, i32) {
    %c0_i32 = arith.constant 0 : i32
    %c0_i32_0 = arith.constant 0 : i32
    %c0_i32_1 = arith.constant 0 : i32
    return %c0_i32, %c0_i32_0 : i32, i32
  }
  func.func @transform_2(%arg0: i32) -> (i32, i32) {
    %c0_i32 = arith.constant 0 : i32
    %c0_i32_0 = arith.constant 0 : i32
    %c0_i32_1 = arith.constant 0 : i32
    return %c0_i32, %c0_i32_0 : i32, i32
  }
  func.func @transform_3(%arg0: i32) -> (i32, i32) {
    %c0_i32 = arith.constant 0 : i32
    %c0_i32_0 = arith.constant 0 : i32
    %c0_i32_1 = arith.constant 0 : i32
    return %c0_i32, %c0_i32_0 : i32, i32
  }
  func.func @transform_4(%arg0: i32) -> (i32, i32) {
    %c0_i32 = arith.constant 0 : i32
    %c0_i32_0 = arith.constant 0 : i32
    %c0_i32_1 = arith.constant 0 : i32
    return %c0_i32, %c0_i32_0 : i32, i32
  }
  func.func @transform_5(%arg0: i32) -> (i32, i32) {
    %c0_i32 = arith.constant 0 : i32
    %c0_i32_0 = arith.constant 0 : i32
    %c0_i32_1 = arith.constant 0 : i32
    return %c0_i32, %c0_i32_0 : i32, i32
  }
  func.func @transform_6(%arg0: i32) -> (i32, i32) {
    %c0_i32 = arith.constant 0 : i32
    %c0_i32_0 = arith.constant 0 : i32
    %c0_i32_1 = arith.constant 0 : i32
    return %c0_i32, %c0_i32_0 : i32, i32
  }
  func.func @transform_7(%arg0: i32) -> (i32, i32) {
    %c0_i32 = arith.constant 0 : i32
    %c0_i32_0 = arith.constant 0 : i32
    return %arg0, %c0_i32 : i32, i32
  }
}

</mosaic_0001>

<bundles_post_ra>
// kernel: _forward_2d.1
= control target key start
LH: loop header
LB: loop body
LE: loop exit
PB: predicated region body
PF: predicated region fallthrough
CT: control target
= control target key end

     0   :  { %12 = vsyncpa [#allocation3], 0  ;;  %s1434_s0 = inlined_call_operand.hbm [shape: f32[16,32], index: 0, kind: input, shape index: {}]   ;;  %s1435_s1 = inlined_call_operand.hbm [shape: f32[32,32], index: 1, kind: input, shape index: {}]   ;;  %s1436_s2 = inlined_call_operand.vmem [shape: f32[1,32], index: 2, kind: input, shape index: {}]   ;;  %s1437_s3 = inlined_call_operand.vmem [shape: f32[1,32], index: 3, kind: input, shape index: {}]   ;;  %s1438_s4 = inlined_call_operand.vmem [shape: f32[1,32], index: 4, kind: input, shape index: {}]   ;;  %s1439_s5 = inlined_call_operand.hbm [shape: f32[32,768], index: 5, kind: input, shape index: {}]   ;;  %s1440_s6 = inlined_call_operand.vmem [shape: f32[1,768], index: 6, kind: input, shape index: {}]   ;;  %s1441_s7 = inlined_call_operand.hbm [shape: f32[16,768], index: 7, kind: output, shape index: {}]  }
   0x1   :  { %14 = vsyncpa [#allocation3 + $0x1], 0 }
   0x2   :  { %15 = vsyncpa [#allocation6], 0 }
   0x3   :  { %16 = vsyncpa [#allocation4], 0 }
   0x4   :  { %18 = vsyncpa [#allocation4 + $0x1], 0  ;;  %s1182_s24 = smov 0   ;;  %s1184_s25 = smov 0  }
   0x5   :  { %s1186_s26 = smov 0   ;;  %s1188_s27 = smov 0  }
   0x6 LB: > { %s1203_s28 = sadd.s32 4294967295, %s1129_s27   ;;  %s826_s29 = sadd.s32 4294967294, %s1129_s27   ;;  %s1129_s27 = sphi %s1188_s27, %s1461_s27   ;;  %s1125_s26 = sphi %s1186_s26, %s1460_s26   ;;  %s1121_s25 = sphi %s1184_s25, %s1459_s25   ;;  %s1117_s24 = sphi %s1182_s24, %s1458_s24  }
   0x7   : > { %p44_p0 = scmp.ne.s32.totalorder %s1121_s25, %s1117_s24  ;;  %p1442_p1 = scmp.eq.s32.totalorder %s1203_s28, 0 }
   0x8   : > { %p200_p3 = scmp.eq.s32.totalorder %s826_s29, 1  ;;  %p827_p5 = scmp.ge.s32.totalorder %s1129_s27, 1 }
   0x9   : > { %p1212_p4 = por %p1442_p1, %p44_p0  ;;  %p207_p7 = scmp.lt.s32.totalorder %s1129_s27, 3 }
   0xa   : > { %p1217_p6 = por %p200_p3, %p44_p0  ;;  %s1131_s10 = smov [#allocation5]  }
   0xb   : > { %s1445_s30 = scalar_select %p1212_p4, 1, 0 }
   0xc   : > { %s1446_s8 = scalar_select %p1217_p6, 1, 0 }
   0xd   : > { %p1222_p8 = pnand %p827_p5, %p207_p7  ;;  %s219_s11 = sshll.u32 %s1131_s10, 4  ;;  %s1226_s11 = int_to_ptr.vmem [resolvable:$true] %s219_s11 }
   0xe   : > { %s1132_s13 = smov [#allocation7]   ;;  %s973_s17 = scalar_lea.hbm %s1435_s1, 512 }
   0xf   : > { %p907_p9 = pneg %p1222_p8  ;;  %s241_s14 = sshll.u32 %s1132_s13, 4  ;;  %s1237_s14 = int_to_ptr.vmem [resolvable:$true] %s241_s14 }
  0x10   : > { %p974_p12 = scmp.ne.s32.totalorder %s1435_s1, %s973_s17  ;;  %p980_p5 = scmp.lt.u32.totalorder %s973_s17, %s1435_s1 }
  0x11   : > { %p1233_p11 = pnand %p907_p9, %p1442_p1 }
  0x13   : > { %p975_p13 = pneg %p1233_p11 }
  0x15   : > { %p976_p0 = pnand %p975_p13, %p974_p12 }
  0x17   : > { %p977_p3 = pneg %p976_p0 }
  0x19   : > { %p982_p7 = pnand %p980_p5, %p977_p3 }
  0x1b   : > { %985 = shalt.err (!%p982_p7)
}
  0x1c   : > { %s986_s22 = scalar_lea.vmem %s1226_s11, 512  ;;  %p994_p2 = scmp.lt.s32.totalorder %s1226_s11, %s1226_s11 }
  0x1d   : > { %p987_p9 = scmp.ne.s32.totalorder %s1226_s11, %s986_s22  ;;  %p995_p12 = scmp.lt.s32.totalorder %s986_s22, %s986_s22 }
  0x1f   : > { %p989_p10 = pnand %p987_p9, %p975_p13  ;;  %p996_p0 = por %p995_p12, %p994_p2 }
  0x21   : > { %p990_p1 = pneg %p989_p10 }
  0x23   : > { %p997_p6 = pnand %p996_p0, %p990_p1 }
  0x25   : > { %1000 = shalt.err (!%p997_p6)
}
  0x26   : > { %s1133_s23 = smov 128   ;;  %s1134_s29 = smov 8  }
  0x27   : > { %910 = dma.hbm_to_vmem [thread:$0]  (!%p1233_p11), %s1435_s1, 512, %s1226_s11, [#allocation6], %s1133_s23, %s1133_s23, %s1134_s29  }
  0x28   : > { %s1001_s17 = scalar_lea.hbm %s1439_s5, 3072 }
  0x29   : > { %p1002_p2 = scmp.ne.s32.totalorder %s1439_s5, %s1001_s17  ;;  %p1008_p10 = scmp.lt.u32.totalorder %s1001_s17, %s1439_s5 }
  0x2b   : > { %p1004_p1 = pnand %p1002_p2, %p975_p13 }
  0x2d   : > { %p1005_p6 = pneg %p1004_p1 }
  0x2f   : > { %p1010_p3 = pnand %p1008_p10, %p1005_p6 }
  0x31   : > { %1013 = shalt.err (!%p1010_p3)
}
  0x32   : > { %s1014_s11 = scalar_lea.vmem %s1237_s14, 3072  ;;  %p1022_p12 = scmp.lt.s32.totalorder %s1237_s14, %s1237_s14 }
  0x33   : > { %p1015_p5 = scmp.ne.s32.totalorder %s1237_s14, %s1014_s11  ;;  %p1023_p0 = scmp.lt.s32.totalorder %s1014_s11, %s1014_s11 }
  0x35   : > { %p1017_p7 = pnand %p1015_p5, %p975_p13  ;;  %p1024_p2 = por %p1023_p0, %p1022_p12 }
  0x37   : > { %p1018_p9 = pneg %p1017_p7 }
  0x39   : > { %p1025_p1 = pnand %p1024_p2, %p1018_p9 }
  0x3b   : > { %1028 = shalt.err (!%p1025_p1)
}
  0x3c   : > { %s1135_s22 = smov 768   ;;  %s1136_s23 = smov 48  }
  0x3d   : > { %913 = dma.hbm_to_vmem [thread:$0]  (!%p1233_p11), %s1439_s5, 3072, %s1237_s14, [#allocation6], %s1135_s22, %s1135_s22, %s1136_s23  }
  0x3e   : > { %s1292_s13 = sadd.s32 1, %s1129_s27   ;;  %s31_s16 = sadd.s32 1, %s1125_s26 }
  0x3f   : > { %s28_s15 = ssub.s32 %s1129_s27, %s1292_s13  ;;  %p38_p6 = scmp.ne.s32.totalorder %s1125_s26, %s1121_s25 }
  0x40   : > { %p29_p13 = scmp.eq.s32.totalorder %s28_s15, 0  ;;  %p39_p10 = scmp.eq.s32.totalorder %s1129_s27, 0 }
  0x41   : > { %p1449_p5 = scmp.eq.s32.totalorder %s1203_s28, 1  ;;  %p924_p9 = scmp.lt.s32.totalorder %s1129_s27, 2 }
  0x42   : > { %s1301_s17 = scalar_select %p29_p13, %s1125_s26, %s31_s16  }
  0x43   : > { %p40_p3 = por %p39_p10, %p38_p6  ;;  %p1305_p7 = por %p1449_p5, %p38_p6 }
  0x44   : > { %s258_s12 = sand.u32 1, %s1125_s26   ;;  %s832_s14 = sshll.u32 %s1129_s27, 7 }
  0x45   : > { %s1450_s18 = scalar_select %p1305_p7, 1, 0 }
  0x46   : > { %s831_s19 = sshll.u32 %s258_s12, 3  ;;  %s1315_s11 = scalar_lea.hbm %s1434_s0, %s832_s14 }
  0x47   : > { %s262_s22 = scalar_lea.vmem [#allocation2], %s831_s19  ;;  %p1319_p11 = pnand %p924_p9, %p40_p3 }
  0x48   : > { %s269_s23 = sshll.u32 %s262_s22, 4  ;;  %s259_s10 = scalar_lea.sflag [#allocation3], %s258_s12  ;;  %s1317_s23 = int_to_ptr.vmem [resolvable:$true] %s269_s23 }
  0x49   : > { %s1029_s15 = scalar_lea.hbm %s1315_s11, 128  ;;  %p1031_p0 = pneg %p1319_p11 }
  0x4a   : > { %p1030_p12 = scmp.ne.s32.totalorder %s1315_s11, %s1029_s15  ;;  %s1034_s14 = scalar_lea.hbm %s1434_s0, 256 }
  0x4b   : > { %p1035_p13 = scmp.lt.u32.totalorder %s1315_s11, %s1434_s0  ;;  %p1036_p6 = scmp.lt.u32.totalorder %s1034_s14, %s1029_s15 }
  0x4c   : > { %p1032_p2 = pnand %p1031_p0, %p1030_p12  ;;  %p1038_p3 = scmp.lt.u32.totalorder %s1029_s15, %s1315_s11 }
  0x4d   : > { %p1037_p10 = por %p1036_p6, %p1035_p13 }
  0x4e   : > { %p1033_p1 = pneg %p1032_p2 }
  0x4f   : > { %p1039_p5 = por %p1038_p3, %p1037_p10 }
  0x51   : > { %p1040_p9 = pnand %p1039_p5, %p1033_p1 }
  0x53   : > { %1043 = shalt.err (!%p1040_p9)
}
  0x54   : > { %s1044_s12 = scalar_lea.vmem %s1317_s23, 128  ;;  %s1137_s22 = smov [#allocation2]  }
  0x55   : > { %p1045_p12 = scmp.ne.s32.totalorder %s1317_s23, %s1044_s12  ;;  %s1049_s16 = sshll.u32 %s1137_s22, 4  ;;  %s1050_s16 = int_to_ptr.vmem [resolvable:$false] %s1049_s16 }
  0x56   : > { %s1051_s19 = scalar_lea.vmem %s1050_s16, 256  ;;  %p1052_p4 = scmp.lt.s32.totalorder %s1317_s23, %s1050_s16 }
  0x57   : > { %p1047_p2 = pnand %p1045_p12, %p1031_p0  ;;  %p1053_p13 = scmp.lt.s32.totalorder %s1051_s19, %s1044_s12 }
  0x59   : > { %p1048_p7 = pneg %p1047_p2  ;;  %p1054_p6 = por %p1053_p13, %p1052_p4 }
  0x5b   : > { %p1055_p10 = pnand %p1054_p6, %p1048_p7 }
  0x5d   : > { %1058 = shalt.err (!%p1055_p10)
}
  0x5e   : > { %917 = dma.hbm_to_vmem [thread:$0]  (!%p1319_p11), %s1315_s11, 128, %s1317_s23, %s259_s10  }
  0x5f   : > { %278 = sbr.rel (%p1222_p8) target bundleno = 897 (0x381), region = 48  ;;  %s1351_s15 = sand.u32 (!%p1222_p8), 1, %s1121_s25  }
  0x60   : > { %s834_s14 = sshll.u32 (!%p1222_p8), %s1351_s15, 3  ;;  %s281_s20 = scalar_lea.sflag (!%p1222_p8), [#allocation3], %s1351_s15 }
  0x61   : > { %s284_s21 = scalar_lea.vmem (!%p1222_p8), [#allocation2], %s834_s14  ;;  %p1452_p4 = scmp.ne.s32.totalorder (!%p1222_p8), %s1445_s30, 0 }
  0x66   : > { %1104 = dma.done.wait (%p1452_p4), %s281_s20, 128  }
  0x67   : > { %1106 = vsyncadd (%p1452_p4), %s281_s20, 4294967168  ;;  %p1453_p7 = scmp.eq.s32.totalorder %s1203_s28, 0 }
  0x69   : > { %1108 = dma.done.wait (%p1453_p7), [#allocation6], 3584   ;;  %p1454_p11 = pmov %p1453_p7 }
  0x6a   : > { %v1138_v0 = vmov 0.0|0.0   ;;  %vm1139_vm0 = vmmov 0   ;;  %v1140_v1 = vmov 0.0   ;;  %v324_v2 = vld [vmem:[#allocation5] sm:$0xff]  ;;  %v325_v3 = vld [vmem:[#allocation5 + $0x8] sm:$0xff]  ;;  %v326_v4 = vld [vmem:[#allocation5 + $0x10] sm:$0xff] }
  0x6b   : > { %1110 = vsyncadd (%p1454_p11), [#allocation6], 4294963712  ;;  %863 = vmatprep.subr.bf16.mxu0 %v1138_v0  ;;  %860 = vmatprep.mubr.msk.f32.mxu0 %vm1139_vm0, %v1140_v1  ;;  %v864_v5 = vpack.c.bf16 %v325_v3, %v324_v2  ;;  %v327_v6 = vld [vmem:[#allocation5 + $0x18] sm:$0xff]  ;;  %vm335_vm1 = vcmask 261120   ;;  %v837_v9 = vld [vmem:[%s1436_s2] ss:$0 sm:$0xff] }
  0x6c   : > { %567 = vmatprep.mubr.f32.mxu1 %v1140_v1  ;;  %v867_v7 = vpack.c.bf16 %v327_v6, %v326_v4  ;;  %v323_v8 = vld [vmem:[%s284_s21] sm:$0xff]  ;;  %v445_v24 = vld [vmem:[#allocation7 + $0x8] sm:$0xff]  ;;  %v444_v26 = vld [vmem:[#allocation7] sm:$0xff]  ;;  %v470_v6 = vlaneseq  ;;  %s893_s16 = smul.u32 48, %s1351_s15  ;;  %s723_s11 = scalar_lea.sflag [#allocation4], %s1351_s15 }
  0x6d   : > { %865 = vmatpush3.bf16.msra.mxu0 %v864_v5  ;;  %v451_v25 = vld [vmem:[#allocation7 + $0x38] sm:$0xff]  ;;  %v450_v28 = vld [vmem:[#allocation7 + $0x30] sm:$0xff]  ;;  %v453_v30 = vld [vmem:[#allocation7 + $0x48] sm:$0xff]  ;;  %s894_s14 = smul.u32 768, %s1203_s28  ;;  %p1455_p0 = scmp.ne.s32.totalorder %s1450_s18, 0 }
  0x6e   : > { %866 = vmatprep.subr.bf16.mxu0 %v1138_v0  ;;  %v869_v27 = vpack.c.bf16 %v451_v25, %v445_v24  ;;  %v447_v29 = vld [vmem:[#allocation7 + $0x18] sm:$0xff]  ;;  %v871_v31 = vpack.c.bf16 %v450_v28, %v444_v26  ;;  %v446_v33 = vld [vmem:[#allocation7 + $0x10] sm:$0xff]  ;;  %v452_v34 = vld [vmem:[#allocation7 + $0x40] sm:$0xff]  ;;  %s322_s19 = scalar_lea.vmem [#allocation8], %s893_s16  ;;  %s1141_s28 = smov [#allocation8]  }
  0x6f   : > { %v877_v32 = vpack.c.bf16 %v453_v30, %v447_v29  ;;  %v457_v35 = vld [vmem:[#allocation7 + $0x68] sm:$0xff]  ;;  %v879_v36 = vpack.c.bf16 %v452_v34, %v446_v33  ;;  %v463_v37 = vld [vmem:[#allocation7 + $0x98] sm:$0xff]  ;;  %v456_v38 = vld [vmem:[#allocation7 + $0x60] sm:$0xff]  ;;  %s737_s20 = sshll.u32 %s322_s19, 4  ;;  %s1390_s9 = scalar_lea.hbm %s1441_s7, %s894_s14  ;;  %s1392_s20 = int_to_ptr.vmem [resolvable:$true] %s737_s20 }
  0x70   : > { %870 = vmatprep.subr.bf16.mxu1 %v869_v27  ;;  %v462_v39 = vld [vmem:[#allocation7 + $0x90] sm:$0xff]  ;;  %v873_v40 = vpack.c.bf16 %v463_v37, %v457_v35  ;;  %v459_v42 = vld [vmem:[#allocation7 + $0x78] sm:$0xff]  ;;  %v465_v43 = vld [vmem:[#allocation7 + $0xa8] sm:$0xff]  ;;  %s1059_s23 = scalar_lea.vmem %s1392_s20, 768  ;;  %s1063_s29 = sshll.u32 %s1141_s28, 4  ;;  %s1064_s29 = int_to_ptr.vmem [resolvable:$false] %s1063_s29 }
  0x71   : > { %868 = vmatpush3.bf16.msra.mxu0 %v867_v7  ;;  %872 = vmatpush1.bf16.msra.mxu1 %v871_v31  ;;  %v875_v41 = vpack.c.bf16 %v462_v39, %v456_v38  ;;  %v458_v44 = vld [vmem:[#allocation7 + $0x70] sm:$0xff]  ;;  %v881_v45 = vpack.c.bf16 %v465_v43, %v459_v42  ;;  %v464_v46 = vld [vmem:[#allocation7 + $0xa0] sm:$0xff]  ;;  %v449_v47 = vld [vmem:[#allocation7 + $0x28] sm:$0xff]  ;;  %v471_v7 = vshrl.u32 %v470_v6, 7  ;;  %p1060_p8 = scmp.ne.s32.totalorder %s1392_s20, %s1059_s23  ;;  %s1065_s10 = scalar_lea.vmem %s1064_s29, 1536 }
  0x72   : > { %878 = vmatprep.subr.bf16.mxu0 %v877_v32  ;;  %v455_v48 = vld [vmem:[#allocation7 + $0x58] sm:$0xff]  ;;  %874 = vmatprep.subr.bf16.mxu1 %v873_v40  ;;  %v883_v49 = vpack.c.bf16 %v464_v46, %v458_v44  ;;  %v839_v55 = vld [vmem:[%s1437_s3] ss:$0 sm:$0xff]  ;;  %v448_v57 = vld [vmem:[#allocation7 + $0x20] sm:$0xff]  ;;  %p1066_p5 = scmp.lt.s32.totalorder %s1392_s20, %s1064_s29  ;;  %p1067_p9 = scmp.lt.s32.totalorder %s1065_s10, %s1059_s23 }
  0x73   : > { %v885_v50 = vpack.c.bf16 %v455_v48, %v449_v47  ;;  %v454_v58 = vld [vmem:[#allocation7 + $0x50] sm:$0xff]  ;;  %v461_v60 = vld [vmem:[#allocation7 + $0x88] sm:$0xff]  ;;  %v467_v61 = vld [vmem:[#allocation7 + $0xb8] sm:$0xff]  ;;  %v492_v25 = vsub.s32 5, %v471_v7  ;;  %p1061_p1 = pnand %p1060_p8, %p1455_p0 }
  0x74   : > { %861 = vmatmul.mubr.msk.f32.vlgmr.msra.gmra.mrb[0].mxu0 %vm335_vm1, %v323_v8  ;;  %v840_v59 = vld [vmem:[%s1438_s4] ss:$0 sm:$0xff]  ;;  %v887_v63 = vpack.c.bf16 %v454_v58, %v448_v57  ;;  %v889_v2 = vpack.c.bf16 %v467_v61, %v461_v60  ;;  %v460_v3 = vld [vmem:[#allocation7 + $0x80] sm:$0xff]  ;;  %v472_v8 = vsub.s32 0, %v471_v7  ;;  %p1068_p12 = por %p1067_p9, %p1066_p5 }
  0x75   : > { %638 = vmatprep.mubr.f32.mxu0 %v1140_v1  ;;  %880 = vmatpush1.bf16.msra.mxu0 %v879_v36  ;;  %v466_v4 = vld [vmem:[#allocation7 + $0xb0] sm:$0xff]  ;;  %p1062_p3 = pneg %p1061_p1 }
  0x76   : > { %882 = vmatprep.subr.bf16.mxu0 %v881_v45  ;;  %876 = vmatpush1.bf16.msra.mxu1 %v875_v41  ;;  %v891_v5 = vpack.c.bf16 %v466_v4, %v460_v3 }
  0x77   : > { %886 = vmatprep.subr.bf16.mxu1 %v885_v50  ;;  %p1069_p2 = pnand %p1068_p12, %p1062_p3 }
  0x79   : > { %884 = vmatpush1.bf16.msra.mxu0 %v883_v49 }
 0x147   : > { %v405_v10 = vpop.f32.mrb[0].mxu0 }
 0x148   : > { %v406_v11 = vadd.f32 %v837_v9, %v405_v10  ;;  %v862_v12 = vpop.f32.mrb[1].mxu0  ;;  %v480_v9 = vsub.s32 2, %v471_v7  ;;  %v468_v10 = vld [vmem:[%s1440_s6] sm:$0x3f] }
 0x149   : > { %v484_v12 = vsub.s32 3, %v471_v7  ;;  %v493_v27 = vrot.slane %v468_v10, %v492_v25 }
 0x14a   : > { %v410_v13 = vmul.f32 0.70710677, %v406_v11  ;;  %v409_v15 = vmul.f32 0.5, %v406_v11  ;;  %v476_v11 = vsub.s32 1, %v471_v7 }
 0x14c   : > { %969 = verf.f32 %v410_v13  ;;  %v473_v13 = vrot.slane %v468_v10, %v472_v8 }
 0x156   : > { %v970_v14 = vpop.eup %969 }
 0x157   : > { %v412_v16 = vadd.f32 1.0, %v970_v14  ;;  %v481_v14 = vrot.slane %v468_v10, %v480_v9 }
 0x159   : > { %v413_v17 = vmul.f32 %v412_v16, %v409_v15  ;;  %v477_v15 = vrot.slane %v468_v10, %v476_v11  ;;  %v485_v16 = vrot.slane %v468_v10, %v484_v12 }
 0x15b   : > { %v414_v18 = vsel %vm335_vm1, %v413_v17, 0.0 }
 0x15c   : > { %415 = vadd.xlane.f32.xlu0 %v414_v18 }
 0x1e9   : > { %v416_v19 = vpop.xlane.xlu0 %415 }
 0x1ea   : > { %v418_v20 = vmul.f32 0.03125, %v416_v19 }
 0x1ec   : > { %v419_v21 = vsub.f32 %v413_v17, %v418_v20 }
 0x1ee   : > { %v420_v22 = vmul.f32 %v419_v21, %v419_v21 }
 0x1f0   : > { %v421_v23 = vsel %vm335_vm1, %v420_v22, 0.0  ;;  %v488_v22 = vsub.s32 4, %v471_v7 }
 0x1f1   : > { %422 = vadd.xlane.f32.xlu0 %v421_v23 }
 0x1f2   : > { %v489_v26 = vrot.slane %v468_v10, %v488_v22 }
 0x27e   : > { %v423_v51 = vpop.xlane.xlu0 %422 }
 0x27f   : > { %v424_v52 = vmul.f32 0.03125, %v423_v51 }
 0x281   : > { %v425_v53 = vadd.f32 1e-12, %v424_v52 }
 0x283   : > { %971 = vrsqrt.f32 %v425_v53 }
 0x28d   : > { %v972_v54 = vpop.eup %971 }
 0x28e   : > { %v427_v56 = vmul.f32 %v972_v54, %v419_v21 }
 0x290   : > { %v435_v62 = vmul.f32 %v839_v55, %v427_v56 }
 0x292   : > { %v443_v0 = vadd.f32 %v840_v59, %v435_v62 }
 0x294   : > { %841 = vmatmul.mubr.msk.f32.vlgmr.msra.gmra.mrb[0].mxu1 %vm335_vm1, %v443_v0  ;;  %842 = vmatmul.mubr.msk.f32.vlgmr.msra.gmra.mrb[2].mxu0 %vm335_vm1, %v443_v0 }
 0x295   : > { %888 = vmatpush1.bf16.msra.mxu1 %v887_v63  ;;  %709 = vmatprep.mubr.f32.mxu1 %v1140_v1 }
 0x296   : > { %890 = vmatprep.subr.bf16.mxu1 %v889_v2 }
 0x299   : > { %892 = vmatpush1.bf16.msra.mxu1 %v891_v5 }
 0x29c   : > { %843 = vmatmul.mubr.msk.f32.vlgmr.msra.gmra.mrb[2].mxu1 %vm335_vm1, %v443_v0 }
 0x367   : > { %v569_v1 = vpop.f32.mrb[0].mxu1  ;;  %v640_v17 = vpop.f32.mrb[2].mxu0 }
 0x368   : > { %v570_v18 = vadd.f32 %v569_v1, %v473_v13  ;;  %v641_v19 = vadd.f32 %v640_v17, %v481_v14  ;;  %v571_v20 = vpop.f32.mrb[1].mxu1  ;;  %v642_v21 = vpop.f32.mrb[3].mxu0 }
 0x369   : > { %v572_v23 = vadd.f32 %v571_v20, %v477_v15  ;;  %v643_v24 = vadd.f32 %v642_v21, %v485_v16 }
 0x36a   : > { %716 = vst [vmem:[%s322_s19] sm:$0xff] %v570_v18  ;;  %718 = vst [vmem:[%s322_s19 + $0x10] sm:$0xff] %v641_v19 }
 0x36b   : > { %717 = vst [vmem:[%s322_s19 + $0x8] sm:$0xff] %v572_v23  ;;  %719 = vst [vmem:[%s322_s19 + $0x18] sm:$0xff] %v643_v24 }
 0x36f   : > { %v711_v28 = vpop.f32.mrb[2].mxu1 }
 0x370   : > { %v712_v29 = vadd.f32 %v711_v28, %v489_v26  ;;  %v713_v30 = vpop.f32.mrb[3].mxu1 }
 0x371   : > { %v714_v31 = vadd.f32 %v713_v30, %v493_v27 }
 0x372   : > { %720 = vst [vmem:[%s322_s19 + $0x20] sm:$0xff] %v712_v29 }
 0x373   : > { %721 = vst [vmem:[%s322_s19 + $0x28] sm:$0xff] %v714_v31 }
 0x374   : > { %1072 = shalt.err (!%p1069_p2)
}
 0x375   : > { %s1073_s15 = scalar_lea.hbm %s1390_s9, 768  ;;  %s1077_s16 = scalar_lea.hbm %s1441_s7, 1536 }
 0x376   : > { %p1074_p13 = scmp.ne.s32.totalorder %s1390_s9, %s1073_s15  ;;  %p1078_p4 = scmp.lt.u32.totalorder %s1390_s9, %s1441_s7 }
 0x377   : > { %p1079_p7 = scmp.lt.u32.totalorder %s1077_s16, %s1073_s15  ;;  %p1081_p8 = scmp.lt.u32.totalorder %s1073_s15, %s1390_s9 }
 0x378   : > { %p1075_p6 = pnand %p1074_p13, %p1455_p0 }
 0x379   : > { %p1080_p11 = por %p1079_p7, %p1078_p4 }
 0x37a   : > { %p1076_p10 = pneg %p1075_p6 }
 0x37b   : > { %p1082_p1 = por %p1081_p8, %p1080_p11 }
 0x37d   : > { %p1083_p3 = pnand %p1082_p1, %p1076_p10 }
 0x37f   : > { %1086 = shalt.err (!%p1083_p3)
}
 0x380   : > { %905 = dma.vmem_to_hbm [thread:$0]  (%p1455_p0), %s1392_s20, 768, %s1390_s9, %s723_s11  }
 0x381 PF: > { %s749_s21 = sand.u32 1, %s1117_s24   ;;  %p1456_p5 = scmp.ne.s32.totalorder %s1446_s8, 0 }
 0x382   : > { %p1457_p9 = scmp.ge.s32.totalorder %s1129_s27, 2  ;;  %s750_s30 = scalar_lea.sflag [#allocation4], %s749_s21 }
 0x384   : > { %p919_p12 = pnand %p1457_p9, %p1456_p5 }
 0x386   : > { %1112 = dma.done.wait (!%p919_p12), %s750_s30, 768  }
 0x387   : > { %1114 = vsyncadd (!%p919_p12), %s750_s30, 4294966528  ;;  %p21_p2 = scmp.ge.s32.totalorder %s1292_s13, 4   ;;  %s1458_s24 = smov %s1121_s25 }
 0x388   : > { %s1459_s25 = smov %s1125_s26  ;;  %s1460_s26 = smov %s1301_s17 }
 0x389   : > { %s1461_s27 = smov %s1292_s13  ;;  %23 = sbr.rel (!%p21_p2) target bundleno = 6 (0x6), region = 101 }
 0x390   :  { %755 = vsyncpa [#allocation3], 1 }
 0x391   :  { %757 = vsyncpa [#allocation3 + $0x1], 1 }
 0x392   :  { %758 = vsyncpa [#allocation6], 1 }
 0x393   :  { %759 = vsyncpa [#allocation4], 1 }
 0x394   :  { %761 = vsyncpa [#allocation4 + $0x1], 1 }

</bundles_post_ra>
